<compile_context>
chip_gen: v5e
topology: v5e:2x2
jax: 0.10.0
libtpu: 0.0.40
codegen_flags: <defaults>
</compile_context>

<pallas_src>
from functools import partial

import jax
import jax.numpy as jnp
from jax.experimental import pallas as pl
from jax.experimental.pallas import tpu as pltpu


def _comp_kernel(x_ref, blk_ref, w_ref, b_ref, o_ref):
    """out_tile = block_out_tile + x_tile @ W + bias.

    The matmul dtype follows W's dtype (fp32 in training mode, bf16 in eval mode);
    x is cast on the VPU inside the kernel so its HBM stream stays fp32 either way.
    Accumulation is always fp32 on the MXU.
    """
    x = x_ref[...].astype(w_ref.dtype)
    xw = jnp.dot(x, w_ref[...], preferred_element_type=jnp.float32)
    o_ref[...] = blk_ref[...] + xw + b_ref[...]


def _select_tile_and_vmem(M, C, x_bytes, w_bytes, tm_req):
    """Pick a row tile + scoped-VMEM limit that fit v5e/v6e/v7x budgets."""
    tm = M if M <= tm_req else max(8, (tm_req // 8) * 8)

    def vmem_estimate(t):
        per_step = 2 * t * C * (x_bytes + 4 + 4)         # x, block(x), out tiles (double-buffered)
        resident = 2 * C * C * w_bytes + 2 * 8 * 128 * 4  # weight + bias buffers
        return per_step + resident

    budget = 40 << 20            # ~40 MiB: headroom inside v7x's 64 MiB physical VMEM
    while tm > 8 and vmem_estimate(tm) > budget:
        tm = max(8, ((tm // 2) // 8) * 8)

    est = vmem_estimate(tm)
    if est <= (12 << 20):        # below every generation's default scoped limit (v5e = 16 MiB)
        vmem_limit = None
    else:
        vmem_limit = min(56 << 20, max(int(est * 1.25), 20 << 20))
    return tm, vmem_limit


@partial(jax.jit, static_argnames=("training", "tm", "vmem_limit_bytes"))
def compensation_block_forward(x, block_out, lora_weight, lora_bias,
                               *, training: bool = False, tm: int = 512,
                               vmem_limit_bytes=None):
    """x, block_out: [B, L, C]; lora_weight: [C, C]; lora_bias: [C] -> [B, L, C] f32."""
    B, L, C = x.shape
    M = B * L

    x2 = x.reshape(M, C).astype(jnp.float32)
    blk2 = block_out.reshape(M, C).astype(jnp.float32)
    b2 = lora_bias.reshape(1, C).astype(jnp.float32)
    if training:
        # PyTorch training path: fp32 compensation matmul (bit-faithful).
        # TODO(synk): switch this to bf16 if bit-exactness vs PyTorch is not required;
        #             at C=768 the fp32 path flips to MXU-bound on v5e only.
        w = lora_weight.astype(jnp.float32)
    else:
        # PyTorch eval path: half-precision matmul (bf16 on TPU), fp32 accumulation.
        # Only the small resident weight is cast wrapper-side; x is cast per-tile
        # inside the kernel so its HBM stream stays 4 B/elem with no extra pass.
        w = lora_weight.astype(jnp.bfloat16)

    tm, auto_vmem = _select_tile_and_vmem(M, C, x2.dtype.itemsize, w.dtype.itemsize, tm)
    if vmem_limit_bytes is None:
        vmem_limit_bytes = auto_vmem

    bytes_accessed = (x2.size * 4                      # x tiles
                      + blk2.size * 4                  # block(x) tiles
                      + w.size * w.dtype.itemsize      # resident weight
                      + b2.size * 4                    # bias
                      + M * C * 4)                     # output
    cost = pl.CostEstimate(flops=2 * M * C * C, transcendentals=0,
                           bytes_accessed=bytes_accessed)

    out = pl.pallas_call(
        _comp_kernel,
        out_shape=jax.ShapeDtypeStruct((M, C), jnp.float32),
        grid_spec=pltpu.PrefetchScalarGridSpec(
            num_scalar_prefetch=0,
            grid=(pl.cdiv(M, tm),),                       # ragged last block is masked
            in_specs=[
                pl.BlockSpec((tm, C), lambda i: (i, 0)),  # x tile
                pl.BlockSpec((tm, C), lambda i: (i, 0)),  # block(x) tile
                pl.BlockSpec((C, C), lambda i: (0, 0)),   # lora_weight (resident)
                pl.BlockSpec((1, C), lambda i: (0, 0)),   # lora_bias (resident)
            ],
            out_specs=pl.BlockSpec((tm, C), lambda i: (i, 0)),
        ),
        cost_estimate=cost,
        compiler_params=pltpu.CompilerParams(
            dimension_semantics=("parallel",),
            vmem_limit_bytes=vmem_limit_bytes,
        ),
    )(x2, blk2, w, b2)

    return out.reshape(B, L, C)


def init_compensation_params(key, C, *, linear_init=True, r2_score=1.0):
    """Mirrors CompensationBlock.__init__: W is [C_in, C_out]=[C, C], b is [C].
    linear_init and r2_score>0 -> copy provided (W, b); otherwise zeros."""
    kw, kb = jax.random.split(key)
    W = jax.random.normal(kw, (C, C), dtype=jnp.float32) * 0.02
    b = jax.random.normal(kb, (C,), dtype=jnp.float32) * 0.02
    if linear_init and r2_score > 0:
        lora_weight, lora_bias = W, b            # "block using linear init"
    else:
        lora_weight = jnp.zeros((C, C), jnp.float32)   # "block using lora init"
        lora_bias = jnp.zeros((C,), jnp.float32)
    return lora_weight, lora_bias


if __name__ == "__main__":
    key = jax.random.PRNGKey(0)
    kx, kp = jax.random.split(key)

    # Small Swin-like token shapes: batch=2, tokens=8x8=64, channels=96.
    B, L, C = 2, 64, 96
    x = jax.random.normal(kx, (B, L, C), dtype=jnp.float32)

    lora_weight, lora_bias = init_compensation_params(kp, C, linear_init=True, r2_score=0.9)

    # Stand-in for the wrapped external `block` (identity), computed in JAX glue.
    block_out = x

    # Eval-mode path (half-precision compensation matmul, bf16 on TPU).
    out_eval = compensation_block_forward(x, block_out, lora_weight, lora_bias, training=False)
    # Training-mode path (fp32 compensation matmul).
    out_train = compensation_block_forward(x, block_out, lora_weight, lora_bias, training=True)
    jax.block_until_ready(out_eval)
    jax.block_until_ready(out_train)

    # Sanity check against plain-JAX reference (fp32 path).
    ref = block_out + x @ lora_weight + lora_bias
    assert out_train.shape == (B, L, C)
    assert jnp.allclose(out_train, ref, atol=1e-4, rtol=1e-4)
    assert jnp.allclose(out_eval, ref, atol=5e-2, rtol=5e-2)

    # Ragged token count: M=98 with tm=64 exercises the masked last block
    # (no wrapper padding / slicing anywhere on this path).
    B2, L2 = 2, 49
    xr = jax.random.normal(kx, (B2, L2, C), dtype=jnp.float32)
    out_r = compensation_block_forward(xr, xr, lora_weight, lora_bias, training=True, tm=64)
    out_r2 = compensation_block_forward(xr, xr, lora_weight, lora_bias, training=False)
    jax.block_until_ready(out_r)
    jax.block_until_ready(out_r2)
    ref_r = xr + xr @ lora_weight + lora_bias
    assert jnp.allclose(out_r, ref_r, atol=1e-4, rtol=1e-4)
    assert jnp.allclose(out_r2, ref_r, atol=5e-2, rtol=5e-2)

    print("KERNEL_OK")
</pallas_src>

<mosaic_0001>
module attributes {stable_mosaic.version = 11 : i64} {
  func.func @_comp_kernel(%arg0: i32, %arg1: memref<128x96xf32, #tpu.memory_space<vmem>>, %arg2: memref<128x96xf32, #tpu.memory_space<vmem>>, %arg3: memref<96x96xbf16, #tpu.memory_space<vmem>>, %arg4: memref<1x96xf32, #tpu.memory_space<vmem>>, %arg5: memref<128x96xf32, #tpu.memory_space<vmem>>) attributes {dimension_semantics = [#tpu.dimension_semantics<parallel>], iteration_bounds = array<i64: 1>, scalar_prefetch = 0 : i64, scratch_operands = 0 : i64, tpu.core_type = #tpu.core_type<tc>, window_params = [{transform_indices = @transform_0, window_bounds = array<i64: 128, 96>}, {transform_indices = @transform_1, window_bounds = array<i64: 128, 96>}, {pipeline_mode = #tpu.pipeline_mode<synchronous>, transform_indices = @transform_2, window_bounds = array<i64: 96, 96>}, {pipeline_mode = #tpu.pipeline_mode<synchronous>, transform_indices = @transform_3, window_bounds = array<i64: 1, 96>}, {transform_indices = @transform_4, window_bounds = array<i64: 128, 96>}]} {
    %c0 = arith.constant 0 : index
    %c0_0 = arith.constant 0 : index
    %0 = vector.load %arg1[%c0, %c0_0] : memref<128x96xf32, #tpu.memory_space<vmem>>, vector<128x96xf32>
    %1 = arith.truncf %0 : vector<128x96xf32> to vector<128x96xbf16>
    %c0_1 = arith.constant 0 : index
    %c0_2 = arith.constant 0 : index
    %2 = vector.load %arg3[%c0_1, %c0_2] : memref<96x96xbf16, #tpu.memory_space<vmem>>, vector<96x96xbf16>
    %cst = arith.constant dense<0.000000e+00> : vector<128x96xf32>
    %3 = tpu.matmul %1, %2, %cst {dimension_numbers = #tpu.dot_dimension_numbers<[1], [0], [0], [1], [0, 0, 1, 1], [], []>} : vector<128x96xbf16>, vector<96x96xbf16>, vector<128x96xf32> -> vector<128x96xf32>
    %c0_3 = arith.constant 0 : index
    %c0_4 = arith.constant 0 : index
    %4 = vector.load %arg2[%c0_3, %c0_4] : memref<128x96xf32, #tpu.memory_space<vmem>>, vector<128x96xf32>
    %5 = arith.addf %4, %3 : vector<128x96xf32>
    %c0_5 = arith.constant 0 : index
    %c0_6 = arith.constant 0 : index
    %6 = vector.load %arg4[%c0_5, %c0_6] : memref<1x96xf32, #tpu.memory_space<vmem>>, vector<1x96xf32>
    %7 = vector.broadcast %6 : vector<1x96xf32> to vector<128x96xf32>
    %8 = arith.addf %5, %7 : vector<128x96xf32>
    %c0_7 = arith.constant 0 : index
    %c0_8 = arith.constant 0 : index
    %9 = vector.load %arg5[%c0_7, %c0_8] : memref<128x96xf32, #tpu.memory_space<vmem>>, vector<128x96xf32>
    tpu.vector_store %arg5[%c0_7, %c0_8], %8 {strides = array<i32>} : memref<128x96xf32, #tpu.memory_space<vmem>>, vector<128x96xf32>,
    return
  }
  func.func @transform_0(%arg0: i32) -> (i32, i32) {
    %c0_i32 = arith.constant 0 : i32
    %c0_i32_0 = arith.constant 0 : i32
    return %arg0, %c0_i32 : i32, i32
  }
  func.func @transform_1(%arg0: i32) -> (i32, i32) {
    %c0_i32 = arith.constant 0 : i32
    %c0_i32_0 = arith.constant 0 : i32
    return %arg0, %c0_i32 : i32, i32
  }
  func.func @transform_2(%arg0: i32) -> (i32, i32) {
    %c0_i32 = arith.constant 0 : i32
    %c0_i32_0 = arith.constant 0 : i32
    %c0_i32_1 = arith.constant 0 : i32
    return %c0_i32, %c0_i32_0 : i32, i32
  }
  func.func @transform_3(%arg0: i32) -> (i32, i32) {
    %c0_i32 = arith.constant 0 : i32
    %c0_i32_0 = arith.constant 0 : i32
    %c0_i32_1 = arith.constant 0 : i32
    return %c0_i32, %c0_i32_0 : i32, i32
  }
  func.func @transform_4(%arg0: i32) -> (i32, i32) {
    %c0_i32 = arith.constant 0 : i32
    %c0_i32_0 = arith.constant 0 : i32
    return %arg0, %c0_i32 : i32, i32
  }
}

</mosaic_0001>

<bundles_post_ra>
// kernel: compensation_block_forward.1
= control target key start
LH: loop header
LB: loop body
LE: loop exit
PB: predicated region body
PF: predicated region fallthrough
CT: control target
= control target key end

     0   :  { %9 = vsyncpa [#allocation3], 0  ;;  %s533_s0 = inlined_call_operand.vmem [shape: f32[128,96], index: 0, kind: input, shape index: {}]   ;;  %s534_s1 = inlined_call_operand.hbm [shape: f32[128,96], index: 1, kind: input, shape index: {}]   ;;  %s535_s2 = inlined_call_operand.vmem [shape: bf16[96,96], index: 2, kind: input, shape index: {}]   ;;  %s536_s3 = inlined_call_operand.vmem [shape: f32[1,96], index: 3, kind: input, shape index: {}]   ;;  %s537_s4 = inlined_call_operand.hbm [shape: f32[128,96], index: 4, kind: output, shape index: {}]  }
   0x1   :  { %10 = vsyncpa [#allocation4], 0  ;;  %s17_s17 = sshll.u32 %s534_s1, 4  ;;  %s381_s18 = smov [#allocation2]   ;;  %s18_s17 = int_to_ptr.hbm [resolvable:$true] %s17_s17 }
   0x2   :  { %s19_s19 = sshll.u32 %s381_s18, 4  ;;  %s382_s20 = smov 128   ;;  %s20_s19 = int_to_ptr.vmem [resolvable:$true] %s19_s19 }
   0x3   :  { %s383_s21 = smov 8  }
   0x4   :  { %25 = dma.hbm_to_vmem [thread:$0]  %s18_s17, 2048, %s20_s19, [#allocation3], %s382_s20, %s382_s20, %s383_s21  }
   0x5   :  { %377 = dma.done.wait [#allocation3], 2048  }
   0x6   :  { %378 = vsyncadd [#allocation3], 4294965248  ;;  %v305_v0 = vld [vmem:[%s535_s2 + $0x28] sm:$0xff]  ;;  %v304_v1 = vld [vmem:[%s535_s2 + $0x20] sm:$0xff]  ;;  %vm107_vm0 = vcmask 785408   ;;  %s255_s16 = sshll.u32 %s537_s4, 4  ;;  %s256_s16 = int_to_ptr.hbm [resolvable:$true] %s255_s16 }
   0x7   :  { %134 = vmatpush.bf16.msra.mxu0 %v305_v0  ;;  %306 = vmatpush.bf16.msra.mxu1 %v305_v0  ;;  %v303_v2 = vld [vmem:[%s535_s2 + $0x18] sm:$0xff]  ;;  %v302_v3 = vld [vmem:[%s535_s2 + $0x10] sm:$0xff]  ;;  %v301_v4 = vld [vmem:[%s535_s2 + $0x8] sm:$0xff] }
   0x8   :  { %307 = vmatpush.bf16.msra.mxu2 %v305_v0  ;;  %308 = vmatpush.bf16.msra.mxu3 %v305_v0  ;;  %v300_v5 = vld [vmem:[%s535_s2] sm:$0xff]  ;;  %v36_v7 = vld [vmem:[%s533_s0 + $0x8] sm:$0xff]  ;;  %v37_v18 = vld [vmem:[%s533_s0 + $0x10] sm:$0xff] }
   0x9   :  { %v35_v6 = vld [vmem:[%s533_s0] sm:$0xff]  ;;  %v40_v9 = vld [vmem:[%s533_s0 + $0x28] sm:$0xff]  ;;  %v38_v19 = vld [vmem:[%s533_s0 + $0x18] sm:$0xff] }
   0xa   :  { %v39_v8 = vld [vmem:[%s533_s0 + $0x20] sm:$0xff]  ;;  %v44_v11 = vld [vmem:[%s533_s0 + $0x48] sm:$0xff]  ;;  %v51_v14 = vpack.c.bf16 %v36_v7, %v35_v6  ;;  %v41_v20 = vld [vmem:[%s533_s0 + $0x30] sm:$0xff]  ;;  %v52_v26 = vpack.c.bf16 %v38_v19, %v37_v18 }
   0xb   :  { %135 = vmatpush.bf16.msra.mxu0 %v304_v1  ;;  %309 = vmatpush.bf16.msra.mxu1 %v304_v1  ;;  %v43_v10 = vld [vmem:[%s533_s0 + $0x40] sm:$0xff]  ;;  %v48_v13 = vld [vmem:[%s533_s0 + $0x68] sm:$0xff]  ;;  %v53_v15 = vpack.c.bf16 %v40_v9, %v39_v8  ;;  %v42_v21 = vld [vmem:[%s533_s0 + $0x38] sm:$0xff] }
   0xc   :  { %310 = vmatpush.bf16.msra.mxu2 %v304_v1  ;;  %311 = vmatpush.bf16.msra.mxu3 %v304_v1  ;;  %v47_v12 = vld [vmem:[%s533_s0 + $0x60] sm:$0xff]  ;;  %v55_v16 = vpack.c.bf16 %v44_v11, %v43_v10  ;;  %v45_v22 = vld [vmem:[%s533_s0 + $0x50] sm:$0xff]  ;;  %v46_v23 = vld [vmem:[%s533_s0 + $0x58] sm:$0xff]  ;;  %v54_v27 = vpack.c.bf16 %v42_v21, %v41_v20 }
   0xd   :  { %v57_v17 = vpack.c.bf16 %v48_v13, %v47_v12  ;;  %v49_v24 = vld [vmem:[%s533_s0 + $0x70] sm:$0xff]  ;;  %v50_v25 = vld [vmem:[%s533_s0 + $0x78] sm:$0xff]  ;;  %v56_v28 = vpack.c.bf16 %v46_v23, %v45_v22  ;;  %v181_v30 = vld [vmem:[#allocation2] sm:$0xff]  ;;  %s384_s0 = smov [#allocation5]  }
   0xe   :  { %v58_v29 = vpack.c.bf16 %v50_v25, %v49_v24  ;;  %v185_v31 = vld [vmem:[#allocation2 + $0x20] sm:$0xff]  ;;  %v182_v41 = vld [vmem:[#allocation2 + $0x8] sm:$0xff]  ;;  %v183_v57 = vld [vmem:[#allocation2 + $0x10] sm:$0xff] }
   0xf   :  { %136 = vmatpush.bf16.msra.mxu0 %v303_v2  ;;  %312 = vmatpush.bf16.msra.mxu1 %v303_v2  ;;  %v493_v32 = vld [vmem:[%s536_s3] ss:$0 sm:$0xff]  ;;  %v186_v42 = vld [vmem:[#allocation2 + $0x28] sm:$0xff]  ;;  %v187_v58 = vld [vmem:[#allocation2 + $0x30] sm:$0xff]  ;;  %s253_s3 = sshll.u32 %s384_s0, 4  ;;  %s254_s3 = int_to_ptr.vmem [resolvable:$true] %s253_s3 }
  0x10   :  { %313 = vmatpush.bf16.msra.mxu2 %v303_v2  ;;  %314 = vmatpush.bf16.msra.mxu3 %v303_v2  ;;  %v189_v39 = vld [vmem:[#allocation2 + $0x40] sm:$0xff]  ;;  %v190_v55 = vld [vmem:[#allocation2 + $0x48] sm:$0xff]  ;;  %v191_v7 = vld [vmem:[#allocation2 + $0x50] sm:$0xff] }
  0x11   :  { %v193_v40 = vld [vmem:[#allocation2 + $0x60] sm:$0xff]  ;;  %v194_v56 = vld [vmem:[#allocation2 + $0x68] sm:$0xff]  ;;  %v195_v8 = vld [vmem:[#allocation2 + $0x70] sm:$0xff] }
  0x12   :  { %v184_v9 = vld [vmem:[#allocation2 + $0x18] sm:$0xff] }
  0x13   :  { %137 = vmatpush.bf16.msra.mxu0 %v302_v3  ;;  %315 = vmatpush.bf16.msra.mxu1 %v302_v3  ;;  %v188_v10 = vld [vmem:[#allocation2 + $0x38] sm:$0xff] }
  0x14   :  { %316 = vmatpush.bf16.msra.mxu2 %v302_v3  ;;  %317 = vmatpush.bf16.msra.mxu3 %v302_v3  ;;  %v192_v23 = vld [vmem:[#allocation2 + $0x58] sm:$0xff] }
  0x15   :  { %v196_v24 = vld [vmem:[#allocation2 + $0x78] sm:$0xff] }
  0x17   :  { %138 = vmatpush.bf16.msra.mxu0 %v301_v4  ;;  %318 = vmatpush.bf16.msra.mxu1 %v301_v4 }
  0x18   :  { %319 = vmatpush.bf16.msra.mxu2 %v301_v4  ;;  %320 = vmatpush.bf16.msra.mxu3 %v301_v4 }
  0x1b   :  { %139 = vmatpush.bf16.msra.mxu0 %v300_v5  ;;  %321 = vmatpush.bf16.msra.mxu1 %v300_v5 }
  0x1c   :  { %322 = vmatpush.bf16.msra.mxu2 %v300_v5  ;;  %323 = vmatpush.bf16.msra.mxu3 %v300_v5 }
  0x1e   :  { %292 = vmatmul.msk.bf16.vlgmr.msra.gmra.mxu0 %vm107_vm0, %v51_v14  ;;  %294 = vmatmul.msk.bf16.vlgmr.msra.gmra.mxu1 %vm107_vm0, %v53_v15 }
  0x1f   :  { %296 = vmatmul.msk.bf16.vlgmr.msra.gmra.mxu2 %vm107_vm0, %v55_v16  ;;  %298 = vmatmul.msk.bf16.vlgmr.msra.gmra.mxu3 %vm107_vm0, %v57_v17 }
  0x2e   :  { %293 = vmatmul.msk.bf16.gmra.mxu0 %vm107_vm0, %v52_v26  ;;  %295 = vmatmul.msk.bf16.gmra.mxu1 %vm107_vm0, %v54_v27 }
  0x2f   :  { %297 = vmatmul.msk.bf16.gmra.mxu2 %vm107_vm0, %v56_v28  ;;  %299 = vmatmul.msk.bf16.gmra.mxu3 %vm107_vm0, %v58_v29 }
  0x9b   :  { %v141_v33 = vpop.f32.mrf.mxu0  ;;  %v151_v34 = vpop.f32.mrf.mxu1 }
  0x9c   :  { %v197_v35 = vadd.f32 %v181_v30, %v141_v33  ;;  %v201_v36 = vadd.f32 %v185_v31, %v151_v34 }
  0x9e   :  { %v217_v37 = vadd.f32 %v493_v32, %v197_v35  ;;  %v221_v38 = vadd.f32 %v493_v32, %v201_v36 }
  0xa0   :  { %233 = vst.msk [vmem:[#allocation5] sm:$0xff] %vm107_vm0, %v217_v37 }
  0xa1   :  { %237 = vst.msk [vmem:[#allocation5 + $0x20] sm:$0xff] %vm107_vm0, %v221_v38 }
  0xa2   :  { %v161_v43 = vpop.f32.mrf.mxu2  ;;  %v171_v44 = vpop.f32.mrf.mxu3 }
  0xa3   :  { %v205_v45 = vadd.f32 %v189_v39, %v161_v43  ;;  %v209_v46 = vadd.f32 %v193_v40, %v171_v44  ;;  %v143_v47 = vpop.f32.mrf.mxu0  ;;  %v153_v48 = vpop.f32.mrf.mxu1 }
  0xa4   :  { %v198_v49 = vadd.f32 %v182_v41, %v143_v47  ;;  %v202_v50 = vadd.f32 %v186_v42, %v153_v48 }
  0xa5   :  { %v225_v51 = vadd.f32 %v493_v32, %v205_v45  ;;  %v229_v52 = vadd.f32 %v493_v32, %v209_v46 }
  0xa6   :  { %v218_v53 = vadd.f32 %v493_v32, %v198_v49  ;;  %v222_v54 = vadd.f32 %v493_v32, %v202_v50 }
  0xa7   :  { %241 = vst.msk [vmem:[#allocation5 + $0x40] sm:$0xff] %vm107_vm0, %v225_v51 }
  0xa8   :  { %245 = vst.msk [vmem:[#allocation5 + $0x60] sm:$0xff] %vm107_vm0, %v229_v52 }
  0xa9   :  { %234 = vst.msk [vmem:[#allocation5 + $0x8] sm:$0xff] %vm107_vm0, %v218_v53 }
  0xaa   :  { %238 = vst.msk [vmem:[#allocation5 + $0x28] sm:$0xff] %vm107_vm0, %v222_v54  ;;  %v163_v59 = vpop.f32.mrf.mxu2  ;;  %v173_v60 = vpop.f32.mrf.mxu3 }
  0xab   :  { %v206_v61 = vadd.f32 %v190_v55, %v163_v59  ;;  %v210_v62 = vadd.f32 %v194_v56, %v173_v60  ;;  %v146_v63 = vpop.f32.mrf.mxu0  ;;  %v156_v0 = vpop.f32.mrf.mxu1 }
  0xac   :  { %v199_v1 = vadd.f32 %v183_v57, %v146_v63  ;;  %v203_v2 = vadd.f32 %v187_v58, %v156_v0 }
  0xad   :  { %v226_v3 = vadd.f32 %v493_v32, %v206_v61  ;;  %v230_v4 = vadd.f32 %v493_v32, %v210_v62 }
  0xae   :  { %v219_v5 = vadd.f32 %v493_v32, %v199_v1  ;;  %v223_v6 = vadd.f32 %v493_v32, %v203_v2 }
  0xaf   :  { %242 = vst.msk [vmem:[#allocation5 + $0x48] sm:$0xff] %vm107_vm0, %v226_v3 }
  0xb0   :  { %246 = vst.msk [vmem:[#allocation5 + $0x68] sm:$0xff] %vm107_vm0, %v230_v4 }
  0xb1   :  { %235 = vst.msk [vmem:[#allocation5 + $0x10] sm:$0xff] %vm107_vm0, %v219_v5 }
  0xb2   :  { %239 = vst.msk [vmem:[#allocation5 + $0x30] sm:$0xff] %vm107_vm0, %v223_v6  ;;  %v166_v11 = vpop.f32.mrf.mxu2  ;;  %v176_v12 = vpop.f32.mrf.mxu3 }
  0xb3   :  { %v207_v13 = vadd.f32 %v191_v7, %v166_v11  ;;  %v211_v14 = vadd.f32 %v195_v8, %v176_v12  ;;  %v148_v15 = vpop.f32.mrf.mxu0  ;;  %v158_v16 = vpop.f32.mrf.mxu1 }
  0xb4   :  { %v200_v17 = vadd.f32 %v184_v9, %v148_v15  ;;  %v204_v18 = vadd.f32 %v188_v10, %v158_v16 }
  0xb5   :  { %v227_v19 = vadd.f32 %v493_v32, %v207_v13  ;;  %v231_v20 = vadd.f32 %v493_v32, %v211_v14 }
  0xb6   :  { %v220_v21 = vadd.f32 %v493_v32, %v200_v17  ;;  %v224_v22 = vadd.f32 %v493_v32, %v204_v18 }
  0xb7   :  { %243 = vst.msk [vmem:[#allocation5 + $0x50] sm:$0xff] %vm107_vm0, %v227_v19 }
  0xb8   :  { %247 = vst.msk [vmem:[#allocation5 + $0x70] sm:$0xff] %vm107_vm0, %v231_v20 }
  0xb9   :  { %236 = vst.msk [vmem:[#allocation5 + $0x18] sm:$0xff] %vm107_vm0, %v220_v21 }
  0xba   :  { %240 = vst.msk [vmem:[#allocation5 + $0x38] sm:$0xff] %vm107_vm0, %v224_v22  ;;  %v168_v25 = vpop.f32.mrf.mxu2  ;;  %v178_v26 = vpop.f32.mrf.mxu3 }
  0xbb   :  { %v208_v27 = vadd.f32 %v192_v23, %v168_v25  ;;  %v212_v28 = vadd.f32 %v196_v24, %v178_v26 }
  0xbd   :  { %v228_v29 = vadd.f32 %v493_v32, %v208_v27  ;;  %v232_v30 = vadd.f32 %v493_v32, %v212_v28 }
  0xbf   :  { %244 = vst.msk [vmem:[#allocation5 + $0x58] sm:$0xff] %vm107_vm0, %v228_v29 }
  0xc0   :  { %248 = vst.msk [vmem:[#allocation5 + $0x78] sm:$0xff] %vm107_vm0, %v232_v30 }
  0xc1   :  { %261 = dma.vmem_to_hbm [thread:$0]  %s254_s3, 2048, %s256_s16, [#allocation4], %s382_s20, %s382_s20, %s383_s21  }
  0xc2   :  { %379 = dma.done.wait [#allocation4], 2048  }
  0xc3   :  { %380 = vsyncadd [#allocation4], 4294965248 }
  0xc4   :  { %266 = vsyncpa [#allocation3], 1 }
  0xc5   :  { %267 = vsyncpa [#allocation4], 1 }

</bundles_post_ra>
